<compile_context>
chip_gen: v7x
topology: tpu7x:2x2x1
jax: 0.10.0
libtpu: 0.0.40
codegen_flags: <defaults>
</compile_context>

<pallas_src>
import math
import functools

import jax
import jax.numpy as jnp
from jax.experimental import pallas as pl
from jax.experimental.pallas import tpu as pltpu


# 48 MiB scoped VMEM: safe on v7x (64 MiB physical), generous vs. the 32 MiB
# default on v5e/v6e (128 MiB physical).
_VMEM_LIMIT = 48 * 1024 * 1024
# If the full (bf16) weight set fits in this budget, keep it VMEM-resident
# across every row tile (single reduction step in the projection kernels).
_WEIGHT_RESIDENT_BYTES = 8 * 1024 * 1024


def _pick_tile(full, preferred):
    """Largest power-of-two tile <= preferred that exactly divides `full`, else `full`."""
    t = preferred
    while t >= 8:
        if full % t == 0:
            return t
        t //= 2
    return full


# ----------------------------------------------------------------------------
# Fused Q/K/V projection kernel (one pipelined pass, 3 bf16 outputs)
# ----------------------------------------------------------------------------

def _qkv_proj_kernel(xq_ref, xk_ref, xv_ref, w_ref, b_ref,
                     q_out_ref, k_out_ref, v_out_ref,
                     q_acc, k_acc, v_acc):
    kk = pl.program_id(1)

    @pl.when(kk == 0)
    def _init():
        q_acc[...] = jnp.zeros_like(q_acc)
        k_acc[...] = jnp.zeros_like(k_acc)
        v_acc[...] = jnp.zeros_like(v_acc)

    # bf16 MXU operands (weights are pre-cast bf16), f32 accumulation.
    xq = xq_ref[...].astype(jnp.bfloat16)
    xk = xk_ref[...].astype(jnp.bfloat16)
    xv = xv_ref[...].astype(jnp.bfloat16)
    q_acc[...] += jnp.dot(xq, w_ref[0], preferred_element_type=jnp.float32)
    k_acc[...] += jnp.dot(xk, w_ref[1], preferred_element_type=jnp.float32)
    v_acc[...] += jnp.dot(xv, w_ref[2], preferred_element_type=jnp.float32)

    @pl.when(kk == pl.num_programs(1) - 1)
    def _store():
        # f32 bias add, then store bf16 (halves HBM writes of intermediates).
        q_out_ref[...] = (q_acc[...] + b_ref[0]).astype(q_out_ref.dtype)
        k_out_ref[...] = (k_acc[...] + b_ref[1]).astype(k_out_ref.dtype)
        v_out_ref[...] = (v_acc[...] + b_ref[2]).astype(v_out_ref.dtype)


def fused_qkv_projection(xq, xk, xv, wqkv_bf16, bqkv):
    """xq/xk/xv: (M, Din) f32; wqkv: (3, Din, HD) bf16; bqkv: (3, 1, HD) f32."""
    M, Din = xq.shape
    HD = wqkv_bf16.shape[2]
    TM = M if M <= 512 else 512          # partial last row-tile is fine (masked)
    if 3 * Din * HD * 2 <= _WEIGHT_RESIDENT_BYTES:
        TK = Din                          # weights stay VMEM-resident, 1 k-step
    else:
        TK = _pick_tile(Din, 512)
    grid = (pl.cdiv(M, TM), Din // TK)
    out = jax.ShapeDtypeStruct((M, HD), jnp.bfloat16)
    return pl.pallas_call(
        _qkv_proj_kernel,
        out_shape=(out, out, out),
        grid=grid,
        in_specs=[
            pl.BlockSpec((TM, TK), lambda i, k: (i, k)),
            pl.BlockSpec((TM, TK), lambda i, k: (i, k)),
            pl.BlockSpec((TM, TK), lambda i, k: (i, k)),
            pl.BlockSpec((3, TK, HD), lambda i, k: (0, k, 0)),
            pl.BlockSpec((3, 1, HD), lambda i, k: (0, 0, 0)),
        ],
        out_specs=(
            pl.BlockSpec((TM, HD), lambda i, k: (i, 0)),
            pl.BlockSpec((TM, HD), lambda i, k: (i, 0)),
            pl.BlockSpec((TM, HD), lambda i, k: (i, 0)),
        ),
        scratch_shapes=[
            pltpu.VMEM((TM, HD), jnp.float32),
            pltpu.VMEM((TM, HD), jnp.float32),
            pltpu.VMEM((TM, HD), jnp.float32),
        ],
        compiler_params=pltpu.CompilerParams(
            dimension_semantics=("parallel", "arbitrary"),
            vmem_limit_bytes=_VMEM_LIMIT,
        ),
    )(xq, xk, xv, wqkv_bf16, bqkv)


# ----------------------------------------------------------------------------
# Single-stream tiled linear (fallback when seq_len_q != seq_len_k)
# ----------------------------------------------------------------------------

def _linear_kernel(x_ref, w_ref, b_ref, o_ref, acc_ref):
    kk = pl.program_id(1)

    @pl.when(kk == 0)
    def _init():
        acc_ref[...] = jnp.zeros_like(acc_ref)

    acc_ref[...] += jnp.dot(x_ref[...].astype(jnp.bfloat16), w_ref[...],
                            preferred_element_type=jnp.float32)

    @pl.when(kk == pl.num_programs(1) - 1)
    def _store():
        o_ref[...] = (acc_ref[...] + b_ref[...]).astype(o_ref.dtype)


def linear(x2d, w_bf16, b):
    M, K = x2d.shape
    N = w_bf16.shape[1]
    TM = M if M <= 512 else 512
    TK = K if K * N * 2 <= _WEIGHT_RESIDENT_BYTES else _pick_tile(K, 512)
    return pl.pallas_call(
        _linear_kernel,
        out_shape=jax.ShapeDtypeStruct((M, N), jnp.bfloat16),
        grid=(pl.cdiv(M, TM), K // TK),
        in_specs=[
            pl.BlockSpec((TM, TK), lambda i, k: (i, k)),
            pl.BlockSpec((TK, N), lambda i, k: (k, 0)),
            pl.BlockSpec((1, N), lambda i, k: (0, 0)),
        ],
        out_specs=pl.BlockSpec((TM, N), lambda i, k: (i, 0)),
        scratch_shapes=[pltpu.VMEM((TM, N), jnp.float32)],
        compiler_params=pltpu.CompilerParams(
            dimension_semantics=("parallel", "arbitrary"),
            vmem_limit_bytes=_VMEM_LIMIT,
        ),
    )(x2d, w_bf16, b.reshape(1, N))


# ----------------------------------------------------------------------------
# Attention kernel: batched-over-heads online softmax over kv tiles,
# Sq tiled, output projection fused into the epilogue (bf16 MXU).
# ----------------------------------------------------------------------------

def _mha_kernel(q_ref, k_ref, v_ref, wo_ref, bo_ref, o_ref,
                m_ref, l_ref, acc_ref, *, scale):
    kv = pl.program_id(2)

    @pl.when(kv == 0)
    def _init():
        m_ref[...] = jnp.full_like(m_ref, -jnp.inf)
        l_ref[...] = jnp.zeros_like(l_ref)
        acc_ref[...] = jnp.zeros_like(acc_ref)

    # Scale folded into q (H*TQ*D elements, not H*TQ*TK); bf16 MXU operands.
    q = q_ref[0] * scale          # (H, TQ, D) bf16
    k = k_ref[0]                  # (H, TKV, D) bf16
    v = v_ref[0]                  # (H, TKV, D) bf16

    # One batched contraction over the head axis: scores (H, TQ, TKV) in f32.
    s = jax.lax.dot_general(q, k, (((2,), (2,)), ((0,), (0,))),
                            preferred_element_type=jnp.float32)

    m_prev = m_ref[...]                                        # (H, TQ, 1)
    m_new = jnp.maximum(m_prev, jnp.max(s, axis=-1, keepdims=True))
    alpha = jnp.exp(m_prev - m_new)                            # f32 softmax math
    p = jnp.exp(s - m_new)                                     # (H, TQ, TKV) f32

    l_ref[...] = alpha * l_ref[...] + jnp.sum(p, axis=-1, keepdims=True)
    pv = jax.lax.dot_general(p.astype(jnp.bfloat16), v,
                             (((2,), (1,)), ((0,), (0,))),
                             preferred_element_type=jnp.float32)  # (H, TQ, D)
    acc_ref[...] = alpha * acc_ref[...] + pv
    m_ref[...] = m_new

    @pl.when(kv == pl.num_programs(2) - 1)
    def _finalize():
        # Normalize the D-wide accumulator (EUP approx reciprocal).
        acc = acc_ref[...] * pl.reciprocal(l_ref[...], approx=True)  # (H, TQ, D)
        # Fused out_linear: sum_h acc[h] @ wo[h] + bo — bf16 MXU, f32 acc.
        o_h = jax.lax.dot_general(acc.astype(jnp.bfloat16), wo_ref[...],
                                  (((2,), (1,)), ((0,), (0,))),
                                  preferred_element_type=jnp.float32)  # (H, TQ, Dout)
        out = jnp.sum(o_h, axis=0) + bo_ref[...]
        o_ref[0] = out.astype(o_ref.dtype)


def mha_fused(Q, K, V, wo_hdo, bo, *, head_dim):
    """Q: (B,H,Sq,D) bf16; K/V: (B,H,Sk,D) bf16; wo_hdo: (H,D,Dout) bf16 -> (B,Sq,Dout) f32."""
    B, H, Sq, D = Q.shape
    Sk = K.shape[2]
    Dout = wo_hdo.shape[2]
    TQ = _pick_tile(Sq, 256)                 # bounds VMEM vs. sequence length
    TKV = _pick_tile(Sk, 512)                # kv tile (must divide Sk exactly)
    scale = 1.0 / math.sqrt(head_dim)
    kernel = functools.partial(_mha_kernel, scale=scale)
    return pl.pallas_call(
        kernel,
        out_shape=jax.ShapeDtypeStruct((B, Sq, Dout), jnp.float32),
        grid=(B, Sq // TQ, Sk // TKV),
        in_specs=[
            pl.BlockSpec((1, H, TQ, D), lambda b, qi, kv: (b, 0, qi, 0)),
            pl.BlockSpec((1, H, TKV, D), lambda b, qi, kv: (b, 0, kv, 0)),
            pl.BlockSpec((1, H, TKV, D), lambda b, qi, kv: (b, 0, kv, 0)),
            pl.BlockSpec((H, D, Dout), lambda b, qi, kv: (0, 0, 0)),
            pl.BlockSpec((1, Dout), lambda b, qi, kv: (0, 0)),
        ],
        out_specs=pl.BlockSpec((1, TQ, Dout), lambda b, qi, kv: (b, qi, 0)),
        scratch_shapes=[
            pltpu.VMEM((H, TQ, 1), jnp.float32),   # running max (per head, leading-dim indexed)
            pltpu.VMEM((H, TQ, 1), jnp.float32),   # running sum
            pltpu.VMEM((H, TQ, D), jnp.float32),   # accumulator
        ],
        compiler_params=pltpu.CompilerParams(
            dimension_semantics=("parallel", "parallel", "arbitrary"),
            vmem_limit_bytes=_VMEM_LIMIT,
        ),
    )(Q, K, V, wo_hdo, bo.reshape(1, Dout))


# ----------------------------------------------------------------------------
# Module: parameter init + one-time prep + forward
# ----------------------------------------------------------------------------

def init_linear_params(key, in_dim, out_dim):
    kw, kb = jax.random.split(key)
    bound = 1.0 / math.sqrt(in_dim)
    w = jax.random.uniform(kw, (in_dim, out_dim), jnp.float32, -bound, bound)
    b = jax.random.uniform(kb, (out_dim,), jnp.float32, -bound, bound)
    return w, b


def init_attention_params(key, input_dim, output_dim, heads):
    kq, kk, kv, ko = jax.random.split(key, 4)
    wq, bq = init_linear_params(kq, input_dim, output_dim * heads)
    wk, bk = init_linear_params(kk, input_dim, output_dim * heads)
    wv, bv = init_linear_params(kv, input_dim, output_dim * heads)
    wo, bo = init_linear_params(ko, output_dim * heads, output_dim)
    return dict(wq=wq, bq=bq, wk=wk, bk=bk, wv=wv, bv=bv, wo=wo, bo=bo)


def prepare_attention_params(params, *, output_dim, heads):
    """One-time weight prep: pre-stack + pre-cast to bf16 (NOT per forward)."""
    H, D = heads, output_dim
    wqkv = jnp.stack([params["wq"], params["wk"], params["wv"]]).astype(jnp.bfloat16)
    bqkv = jnp.stack([params["bq"], params["bk"], params["bv"]])[:, None, :]
    return dict(
        wqkv=wqkv,                                              # (3, Din, H*D) bf16
        bqkv=bqkv,                                              # (3, 1, H*D)   f32
        wq=params["wq"].astype(jnp.bfloat16),
        wk=params["wk"].astype(jnp.bfloat16),
        wv=params["wv"].astype(jnp.bfloat16),
        bq=params["bq"], bk=params["bk"], bv=params["bv"],
        wo_hdo=params["wo"].reshape(H, D, output_dim).astype(jnp.bfloat16),
        bo=params["bo"],
    )


def attention_forward(prepared, query, key, value, *, output_dim, heads):
    # TODO(synk): optional `mask` argument (masked_fill with -inf) not wired in;
    #             this forward corresponds to mask=None.
    B, Sq, Din = query.shape
    Sk = key.shape[1]
    H, D = heads, output_dim

    xq = query.reshape(B * Sq, Din)
    xk = key.reshape(B * Sk, Din)
    xv = value.reshape(B * Sk, Din)

    if Sq == Sk:
        Q2, K2, V2 = fused_qkv_projection(xq, xk, xv,
                                          prepared["wqkv"], prepared["bqkv"])
    else:
        Q2 = linear(xq, prepared["wq"], prepared["bq"])
        K2 = linear(xk, prepared["wk"], prepared["bk"])
        V2 = linear(xv, prepared["wv"], prepared["bv"])

    # bf16 intermediates: free reshape + one (B,S,H,D)->(B,H,S,D) transpose so
    # every head slab is lane-contiguous inside the attention kernel (no
    # sub-128-lane slicing / masked stores in the kv loop).
    Q = Q2.reshape(B, Sq, H, D).transpose(0, 2, 1, 3)
    K = K2.reshape(B, Sk, H, D).transpose(0, 2, 1, 3)
    V = V2.reshape(B, Sk, H, D).transpose(0, 2, 1, 3)

    return mha_fused(Q, K, V, prepared["wo_hdo"], prepared["bo"], head_dim=D)


# ----------------------------------------------------------------------------
# Pure-JAX reference (module semantics, f32 throughout)
# ----------------------------------------------------------------------------

def attention_reference(params, query, key, value, *, output_dim, heads):
    B, Sq, _ = query.shape
    Sk = key.shape[1]
    H, D = heads, output_dim
    Q = query @ params["wq"] + params["bq"]
    K = key @ params["wk"] + params["bk"]
    V = value @ params["wv"] + params["bv"]
    Q = Q.reshape(B, Sq, H, D).transpose(0, 2, 1, 3)
    K = K.reshape(B, Sk, H, D).transpose(0, 2, 1, 3)
    V = V.reshape(B, Sk, H, D).transpose(0, 2, 1, 3)
    scores = jnp.einsum("bhqd,bhkd->bhqk", Q, K) / math.sqrt(D)
    w = jax.nn.softmax(scores, axis=-1)
    O = jnp.einsum("bhqk,bhkd->bhqd", w, V)
    O = O.transpose(0, 2, 1, 3).reshape(B, Sq, H * D)
    return O @ params["wo"] + params["bo"]


# ----------------------------------------------------------------------------
# Main
# ----------------------------------------------------------------------------

if __name__ == "__main__":
    input_dim, output_dim, heads = 32, 16, 4
    B, S = 2, 8

    root = jax.random.PRNGKey(0)
    kp, kq, kk, kv = jax.random.split(root, 4)

    params = init_attention_params(kp, input_dim, output_dim, heads)
    prepared = prepare_attention_params(params, output_dim=output_dim, heads=heads)

    query = jax.random.normal(kq, (B, S, input_dim), jnp.float32)
    key = jax.random.normal(kk, (B, S, input_dim), jnp.float32)
    value = jax.random.normal(kv, (B, S, input_dim), jnp.float32)

    out = attention_forward(prepared, query, key, value,
                            output_dim=output_dim, heads=heads)
    out = jax.block_until_ready(out)

    ref = attention_reference(params, query, key, value,
                              output_dim=output_dim, heads=heads)
    assert out.shape == (B, S, output_dim)
    # bf16 storage/MXU operands (f32 accumulation) + approx reciprocal -> loosened tol.
    assert jnp.allclose(out, ref, atol=5e-2, rtol=5e-2), "mismatch vs reference"

    print("KERNEL_OK")
</pallas_src>

<mosaic_0001>
module attributes {stable_mosaic.version = 11 : i64} {
  func.func @_qkv_proj_kernel(%arg0: i32, %arg1: i32, %arg2: memref<16x32xf32, #tpu.memory_space<vmem>>, %arg3: memref<16x32xf32, #tpu.memory_space<vmem>>, %arg4: memref<16x32xf32, #tpu.memory_space<vmem>>, %arg5: memref<3x32x64xbf16, #tpu.memory_space<vmem>>, %arg6: memref<3x1x64xf32, #tpu.memory_space<vmem>>, %arg7: memref<16x64xbf16, #tpu.memory_space<vmem>>, %arg8: memref<16x64xbf16, #tpu.memory_space<vmem>>, %arg9: memref<16x64xbf16, #tpu.memory_space<vmem>>, %arg10: memref<16x64xf32, #tpu.memory_space<vmem>>, %arg11: memref<16x64xf32, #tpu.memory_space<vmem>>, %arg12: memref<16x64xf32, #tpu.memory_space<vmem>>) attributes {dimension_semantics = [#tpu.dimension_semantics<parallel>, #tpu.dimension_semantics<arbitrary>], iteration_bounds = array<i64: 1, 1>, scalar_prefetch = 0 : i64, scratch_operands = 3 : i64, tpu.core_type = #tpu.core_type<tc>, window_params = [{transform_indices = @transform_0, window_bounds = array<i64: 16, 32>}, {transform_indices = @transform_1, window_bounds = array<i64: 16, 32>}, {transform_indices = @transform_2, window_bounds = array<i64: 16, 32>}, {transform_indices = @transform_3, window_bounds = array<i64: 3, 32, 64>}, {pipeline_mode = #tpu.pipeline_mode<synchronous>, transform_indices = @transform_4, window_bounds = array<i64: 3, 1, 64>}, {transform_indices = @transform_5, window_bounds = array<i64: 16, 64>}, {transform_indices = @transform_6, window_bounds = array<i64: 16, 64>}, {transform_indices = @transform_7, window_bounds = array<i64: 16, 64>}]} {
    %c0_i32 = arith.constant 0 : i32
    %0 = arith.cmpi eq, %arg1, %c0_i32 : i32
    %1 = arith.extui %0 : i1 to i32
    %c0_i32_0 = arith.constant 0 : i32
    %2 = arith.cmpi ne, %1, %c0_i32_0 : i32
    scf.if %2 {
      %cst_29 = arith.constant 0.000000e+00 : f32
      %30 = vector.broadcast %cst_29 : f32 to vector<16x64xf32>
      %c0_30 = arith.constant 0 : index
      %c0_31 = arith.constant 0 : index
      %31 = vector.load %arg10[%c0_30, %c0_31] : memref<16x64xf32, #tpu.memory_space<vmem>>, vector<16x64xf32>
      tpu.vector_store %arg10[%c0_30, %c0_31], %30 {strides = array<i32>} : memref<16x64xf32, #tpu.memory_space<vmem>>, vector<16x64xf32>,
      %cst_32 = arith.constant 0.000000e+00 : f32
      %32 = vector.broadcast %cst_32 : f32 to vector<16x64xf32>
      %c0_33 = arith.constant 0 : index
      %c0_34 = arith.constant 0 : index
      %33 = vector.load %arg11[%c0_33, %c0_34] : memref<16x64xf32, #tpu.memory_space<vmem>>, vector<16x64xf32>
      tpu.vector_store %arg11[%c0_33, %c0_34], %32 {strides = array<i32>} : memref<16x64xf32, #tpu.memory_space<vmem>>, vector<16x64xf32>,
      %cst_35 = arith.constant 0.000000e+00 : f32
      %34 = vector.broadcast %cst_35 : f32 to vector<16x64xf32>
      %c0_36 = arith.constant 0 : index
      %c0_37 = arith.constant 0 : index
      %35 = vector.load %arg12[%c0_36, %c0_37] : memref<16x64xf32, #tpu.memory_space<vmem>>, vector<16x64xf32>
      tpu.vector_store %arg12[%c0_36, %c0_37], %34 {strides = array<i32>} : memref<16x64xf32, #tpu.memory_space<vmem>>, vector<16x64xf32>,
    } else {
    }
    %c0 = arith.constant 0 : index
    %c0_1 = arith.constant 0 : index
    %3 = vector.load %arg2[%c0, %c0_1] : memref<16x32xf32, #tpu.memory_space<vmem>>, vector<16x32xf32>
    %4 = arith.truncf %3 : vector<16x32xf32> to vector<16x32xbf16>
    %c0_2 = arith.constant 0 : index
    %c0_3 = arith.constant 0 : index
    %5 = vector.load %arg3[%c0_2, %c0_3] : memref<16x32xf32, #tpu.memory_space<vmem>>, vector<16x32xf32>
    %6 = arith.truncf %5 : vector<16x32xf32> to vector<16x32xbf16>
    %c0_4 = arith.constant 0 : index
    %c0_5 = arith.constant 0 : index
    %7 = vector.load %arg4[%c0_4, %c0_5] : memref<16x32xf32, #tpu.memory_space<vmem>>, vector<16x32xf32>
    %8 = arith.truncf %7 : vector<16x32xf32> to vector<16x32xbf16>
    %c0_6 = arith.constant 0 : index
    %c0_7 = arith.constant 0 : index
    %9 = vector.load %arg10[%c0_6, %c0_7] : memref<16x64xf32, #tpu.memory_space<vmem>>, vector<16x64xf32>
    %c0_8 = arith.constant 0 : index
    %c0_9 = arith.constant 0 : index
    %c0_10 = arith.constant 0 : index
    %10 = vector.load %arg5[%c0_8, %c0_9, %c0_10] : memref<3x32x64xbf16, #tpu.memory_space<vmem>>, vector<1x32x64xbf16>
    %11 = vector.shape_cast %10 : vector<1x32x64xbf16> to vector<32x64xbf16>
    %cst = arith.constant dense<0.000000e+00> : vector<16x64xf32>
    %12 = tpu.matmul %4, %11, %cst {dimension_numbers = #tpu.dot_dimension_numbers<[1], [0], [0], [1], [0, 0, 1, 1], [], []>} : vector<16x32xbf16>, vector<32x64xbf16>, vector<16x64xf32> -> vector<16x64xf32>
    %13 = arith.addf %9, %12 : vector<16x64xf32>
    %c0_11 = arith.constant 0 : index
    %c0_12 = arith.constant 0 : index
    %14 = vector.load %arg10[%c0_11, %c0_12] : memref<16x64xf32, #tpu.memory_space<vmem>>, vector<16x64xf32>
    tpu.vector_store %arg10[%c0_11, %c0_12], %13 {strides = array<i32>} : memref<16x64xf32, #tpu.memory_space<vmem>>, vector<16x64xf32>,
    %c0_13 = arith.constant 0 : index
    %c0_14 = arith.constant 0 : index
    %15 = vector.load %arg11[%c0_13, %c0_14] : memref<16x64xf32, #tpu.memory_space<vmem>>, vector<16x64xf32>
    %c1 = arith.constant 1 : index
    %c0_15 = arith.constant 0 : index
    %c0_16 = arith.constant 0 : index
    %16 = vector.load %arg5[%c1, %c0_15, %c0_16] : memref<3x32x64xbf16, #tpu.memory_space<vmem>>, vector<1x32x64xbf16>
    %17 = vector.shape_cast %16 : vector<1x32x64xbf16> to vector<32x64xbf16>
    %cst_17 = arith.constant dense<0.000000e+00> : vector<16x64xf32>
    %18 = tpu.matmul %6, %17, %cst_17 {dimension_numbers = #tpu.dot_dimension_numbers<[1], [0], [0], [1], [0, 0, 1, 1], [], []>} : vector<16x32xbf16>, vector<32x64xbf16>, vector<16x64xf32> -> vector<16x64xf32>
    %19 = arith.addf %15, %18 : vector<16x64xf32>
    %c0_18 = arith.constant 0 : index
    %c0_19 = arith.constant 0 : index
    %20 = vector.load %arg11[%c0_18, %c0_19] : memref<16x64xf32, #tpu.memory_space<vmem>>, vector<16x64xf32>
    tpu.vector_store %arg11[%c0_18, %c0_19], %19 {strides = array<i32>} : memref<16x64xf32, #tpu.memory_space<vmem>>, vector<16x64xf32>,
    %c0_20 = arith.constant 0 : index
    %c0_21 = arith.constant 0 : index
    %21 = vector.load %arg12[%c0_20, %c0_21] : memref<16x64xf32, #tpu.memory_space<vmem>>, vector<16x64xf32>
    %c2 = arith.constant 2 : index
    %c0_22 = arith.constant 0 : index
    %c0_23 = arith.constant 0 : index
    %22 = vector.load %arg5[%c2, %c0_22, %c0_23] : memref<3x32x64xbf16, #tpu.memory_space<vmem>>, vector<1x32x64xbf16>
    %23 = vector.shape_cast %22 : vector<1x32x64xbf16> to vector<32x64xbf16>
    %cst_24 = arith.constant dense<0.000000e+00> : vector<16x64xf32>
    %24 = tpu.matmul %8, %23, %cst_24 {dimension_numbers = #tpu.dot_dimension_numbers<[1], [0], [0], [1], [0, 0, 1, 1], [], []>} : vector<16x32xbf16>, vector<32x64xbf16>, vector<16x64xf32> -> vector<16x64xf32>
    %25 = arith.addf %21, %24 : vector<16x64xf32>
    %c0_25 = arith.constant 0 : index
    %c0_26 = arith.constant 0 : index
    %26 = vector.load %arg12[%c0_25, %c0_26] : memref<16x64xf32, #tpu.memory_space<vmem>>, vector<16x64xf32>
    tpu.vector_store %arg12[%c0_25, %c0_26], %25 {strides = array<i32>} : memref<16x64xf32, #tpu.memory_space<vmem>>, vector<16x64xf32>,
    %c0_i32_27 = arith.constant 0 : i32
    %27 = arith.cmpi eq, %arg1, %c0_i32_27 : i32
    %28 = arith.extui %27 : i1 to i32
    %c0_i32_28 = arith.constant 0 : i32
    %29 = arith.cmpi ne, %28, %c0_i32_28 : i32
    scf.if %29 {
      %c0_29 = arith.constant 0 : index
      %c0_30 = arith.constant 0 : index
      %30 = vector.load %arg10[%c0_29, %c0_30] : memref<16x64xf32, #tpu.memory_space<vmem>>, vector<16x64xf32>
      %c0_31 = arith.constant 0 : index
      %c0_32 = arith.constant 0 : index
      %c0_33 = arith.constant 0 : index
      %31 = vector.load %arg6[%c0_31, %c0_32, %c0_33] : memref<3x1x64xf32, #tpu.memory_space<vmem>>, vector<1x1x64xf32>
      %32 = vector.shape_cast %31 : vector<1x1x64xf32> to vector<1x64xf32>
      %33 = vector.broadcast %32 : vector<1x64xf32> to vector<16x64xf32>
      %34 = arith.addf %30, %33 : vector<16x64xf32>
      %35 = arith.truncf %34 : vector<16x64xf32> to vector<16x64xbf16>
      %c0_34 = arith.constant 0 : index
      %c0_35 = arith.constant 0 : index
      %36 = vector.load %arg7[%c0_34, %c0_35] : memref<16x64xbf16, #tpu.memory_space<vmem>>, vector<16x64xbf16>
      tpu.vector_store %arg7[%c0_34, %c0_35], %35 {strides = array<i32>} : memref<16x64xbf16, #tpu.memory_space<vmem>>, vector<16x64xbf16>,
      %c0_36 = arith.constant 0 : index
      %c0_37 = arith.constant 0 : index
      %37 = vector.load %arg11[%c0_36, %c0_37] : memref<16x64xf32, #tpu.memory_space<vmem>>, vector<16x64xf32>
      %c1_38 = arith.constant 1 : index
      %c0_39 = arith.constant 0 : index
      %c0_40 = arith.constant 0 : index
      %38 = vector.load %arg6[%c1_38, %c0_39, %c0_40] : memref<3x1x64xf32, #tpu.memory_space<vmem>>, vector<1x1x64xf32>
      %39 = vector.shape_cast %38 : vector<1x1x64xf32> to vector<1x64xf32>
      %40 = vector.broadcast %39 : vector<1x64xf32> to vector<16x64xf32>
      %41 = arith.addf %37, %40 : vector<16x64xf32>
      %42 = arith.truncf %41 : vector<16x64xf32> to vector<16x64xbf16>
      %c0_41 = arith.constant 0 : index
      %c0_42 = arith.constant 0 : index
      %43 = vector.load %arg8[%c0_41, %c0_42] : memref<16x64xbf16, #tpu.memory_space<vmem>>, vector<16x64xbf16>
      tpu.vector_store %arg8[%c0_41, %c0_42], %42 {strides = array<i32>} : memref<16x64xbf16, #tpu.memory_space<vmem>>, vector<16x64xbf16>,
      %c0_43 = arith.constant 0 : index
      %c0_44 = arith.constant 0 : index
      %44 = vector.load %arg12[%c0_43, %c0_44] : memref<16x64xf32, #tpu.memory_space<vmem>>, vector<16x64xf32>
      %c2_45 = arith.constant 2 : index
      %c0_46 = arith.constant 0 : index
      %c0_47 = arith.constant 0 : index
      %45 = vector.load %arg6[%c2_45, %c0_46, %c0_47] : memref<3x1x64xf32, #tpu.memory_space<vmem>>, vector<1x1x64xf32>
      %46 = vector.shape_cast %45 : vector<1x1x64xf32> to vector<1x64xf32>
      %47 = vector.broadcast %46 : vector<1x64xf32> to vector<16x64xf32>
      %48 = arith.addf %44, %47 : vector<16x64xf32>
      %49 = arith.truncf %48 : vector<16x64xf32> to vector<16x64xbf16>
      %c0_48 = arith.constant 0 : index
      %c0_49 = arith.constant 0 : index
      %50 = vector.load %arg9[%c0_48, %c0_49] : memref<16x64xbf16, #tpu.memory_space<vmem>>, vector<16x64xbf16>
      tpu.vector_store %arg9[%c0_48, %c0_49], %49 {strides = array<i32>} : memref<16x64xbf16, #tpu.memory_space<vmem>>, vector<16x64xbf16>,
    } else {
    }
    return
  }
  func.func @transform_0(%arg0: i32, %arg1: i32) -> (i32, i32) {
    %c0_i32 = arith.constant 0 : i32
    return %arg0, %arg1 : i32, i32
  }
  func.func @transform_1(%arg0: i32, %arg1: i32) -> (i32, i32) {
    %c0_i32 = arith.constant 0 : i32
    return %arg0, %arg1 : i32, i32
  }
  func.func @transform_2(%arg0: i32, %arg1: i32) -> (i32, i32) {
    %c0_i32 = arith.constant 0 : i32
    return %arg0, %arg1 : i32, i32
  }
  func.func @transform_3(%arg0: i32, %arg1: i32) -> (i32, i32, i32) {
    %c0_i32 = arith.constant 0 : i32
    %c0_i32_0 = arith.constant 0 : i32
    %c0_i32_1 = arith.constant 0 : i32
    return %c0_i32, %arg1, %c0_i32_0 : i32, i32, i32
  }
  func.func @transform_4(%arg0: i32, %arg1: i32) -> (i32, i32, i32) {
    %c0_i32 = arith.constant 0 : i32
    %c0_i32_0 = arith.constant 0 : i32
    %c0_i32_1 = arith.constant 0 : i32
    %c0_i32_2 = arith.constant 0 : i32
    return %c0_i32, %c0_i32_0, %c0_i32_1 : i32, i32, i32
  }
  func.func @transform_5(%arg0: i32, %arg1: i32) -> (i32, i32) {
    %c0_i32 = arith.constant 0 : i32
    %c0_i32_0 = arith.constant 0 : i32
    return %arg0, %c0_i32 : i32, i32
  }
  func.func @transform_6(%arg0: i32, %arg1: i32) -> (i32, i32) {
    %c0_i32 = arith.constant 0 : i32
    %c0_i32_0 = arith.constant 0 : i32
    return %arg0, %c0_i32 : i32, i32
  }
  func.func @transform_7(%arg0: i32, %arg1: i32) -> (i32, i32) {
    %c0_i32 = arith.constant 0 : i32
    %c0_i32_0 = arith.constant 0 : i32
    return %arg0, %c0_i32 : i32, i32
  }
}

</mosaic_0001>

<bundles_post_ra>
// kernel: tpu_custom_call.1
= control target key start
LH: loop header
LB: loop body
LE: loop exit
PB: predicated region body
PF: predicated region fallthrough
CT: control target
= control target key end

     0   :  { %13 = vsyncpa [#allocation6], 0  ;;  %s873_s0 = inlined_call_operand.hbm [shape: f32[16,32], index: 0, kind: input, shape index: {}]   ;;  %s874_s1 = inlined_call_operand.hbm [shape: f32[16,32], index: 1, kind: input, shape index: {}]   ;;  %s875_s2 = inlined_call_operand.hbm [shape: f32[16,32], index: 2, kind: input, shape index: {}]   ;;  %s876_s3 = inlined_call_operand.hbm [shape: bf16[3,32,64], index: 3, kind: input, shape index: {}]   ;;  %s877_s4 = inlined_call_operand.vmem [shape: f32[3,1,64], index: 4, kind: input, shape index: {}]   ;;  %s878_s5 = inlined_call_operand.hbm [shape: bf16[16,64], index: 5, kind: output, shape index: {0}]   ;;  %s879_s6 = inlined_call_operand.hbm [shape: bf16[16,64], index: 6, kind: output, shape index: {1}]   ;;  %s880_s7 = inlined_call_operand.hbm [shape: bf16[16,64], index: 7, kind: output, shape index: {2}]  }
   0x1   :  { %14 = vsyncpa [#allocation9], 0 }
   0x2   :  { %15 = vsyncpa [#allocation12], 0 }
   0x3   :  { %16 = vsyncpa [#allocation7], 0 }
   0x4   :  { %17 = vsyncpa [#allocation15], 0  ;;  %s664_s24 = smov [#allocation8]   ;;  %s665_s26 = smov [#allocation5]  }
   0x5   :  { %s35_s25 = sshll.u32 %s664_s24, 4  ;;  %s23_s27 = sshll.u32 %s665_s26, 4  ;;  %s36_s25 = int_to_ptr.vmem [resolvable:$true] %s35_s25  ;;  %s717_s27 = int_to_ptr.vmem [resolvable:$true] %s23_s27 }
   0x6   :  { %s500_s30 = scalar_lea.hbm %s874_s1, 256 }
   0x7   :  { %p501_p0 = scmp.ne.s32.totalorder %s874_s1, %s500_s30  ;;  %p504_p1 = scmp.lt.u32.totalorder %s500_s30, %s874_s1 }
   0x9   :  { %p506_p2 = pnand %p504_p1, %p501_p0 }
   0xb   :  { %509 = shalt.err (!%p506_p2)
}
   0xc   :  { %s510_s12 = scalar_lea.vmem %s36_s25, 256  ;;  %p515_p4 = scmp.lt.s32.totalorder %s36_s25, %s36_s25 }
   0xd   :  { %p511_p3 = scmp.ne.s32.totalorder %s36_s25, %s510_s12  ;;  %p516_p5 = scmp.lt.s32.totalorder %s510_s12, %s510_s12 }
   0xf   :  { %p517_p6 = por %p516_p5, %p515_p4 }
  0x11   :  { %p518_p7 = pnand %p517_p6, %p511_p3 }
  0x13   :  { %521 = shalt.err (!%p518_p7)
}
  0x14   :  { %s666_s13 = smov 128   ;;  %s667_s14 = smov 8  }
  0x15   :  { %41 = dma.hbm_to_vmem [thread:$0]  %s874_s1, 256, %s36_s25, [#allocation9], %s666_s13, %s666_s13, %s667_s14  }
  0x16   :  { %s522_s19 = scalar_lea.hbm %s873_s0, 256 }
  0x17   :  { %p523_p8 = scmp.ne.s32.totalorder %s873_s0, %s522_s19  ;;  %p526_p9 = scmp.lt.u32.totalorder %s522_s19, %s873_s0 }
  0x19   :  { %p528_p10 = pnand %p526_p9, %p523_p8 }
  0x1b   :  { %531 = shalt.err (!%p528_p10)
}
  0x1c   :  { %s532_s24 = scalar_lea.vmem %s717_s27, 256  ;;  %p537_p12 = scmp.lt.s32.totalorder %s717_s27, %s717_s27 }
  0x1d   :  { %p533_p11 = scmp.ne.s32.totalorder %s717_s27, %s532_s24  ;;  %p538_p13 = scmp.lt.s32.totalorder %s532_s24, %s532_s24 }
  0x1f   :  { %p539_p0 = por %p538_p13, %p537_p12 }
  0x21   :  { %p540_p1 = pnand %p539_p0, %p533_p11 }
  0x23   :  { %543 = shalt.err (!%p540_p1)
}
  0x24   :  { %29 = dma.hbm_to_vmem [thread:$0]  %s873_s0, 256, %s717_s27, [#allocation6], %s666_s13, %s666_s13, %s667_s14  }
  0x25   :  { %s668_s26 = smov [#allocation10]   ;;  %s669_s29 = smov [#allocation11]  }
  0x26   :  { %s47_s28 = sshll.u32 %s668_s26, 4  ;;  %s59_s30 = sshll.u32 %s669_s29, 4  ;;  %s48_s28 = int_to_ptr.vmem [resolvable:$true] %s47_s28  ;;  %s754_s30 = int_to_ptr.vmem [resolvable:$true] %s59_s30 }
  0x27   :  { %s544_s10 = scalar_lea.hbm %s875_s2, 256 }
  0x28   :  { %p545_p2 = scmp.ne.s32.totalorder %s875_s2, %s544_s10  ;;  %p548_p3 = scmp.lt.u32.totalorder %s544_s10, %s875_s2 }
  0x2a   :  { %p550_p4 = pnand %p548_p3, %p545_p2 }
  0x2c   :  { %553 = shalt.err (!%p550_p4)
}
  0x2d   :  { %s554_s0 = scalar_lea.vmem %s48_s28, 256  ;;  %p559_p6 = scmp.lt.s32.totalorder %s48_s28, %s48_s28 }
  0x2e   :  { %p555_p5 = scmp.ne.s32.totalorder %s48_s28, %s554_s0  ;;  %p560_p7 = scmp.lt.s32.totalorder %s554_s0, %s554_s0 }
  0x30   :  { %p561_p8 = por %p560_p7, %p559_p6 }
  0x32   :  { %p562_p9 = pnand %p561_p8, %p555_p5 }
  0x34   :  { %565 = shalt.err (!%p562_p9)
}
  0x35   :  { %53 = dma.hbm_to_vmem [thread:$0]  %s875_s2, 256, %s48_s28, [#allocation9], %s666_s13, %s666_s13, %s667_s14  }
  0x36   :  { %s566_s20 = scalar_lea.hbm %s876_s3, 768 }
  0x37   :  { %p567_p10 = scmp.ne.s32.totalorder %s876_s3, %s566_s20  ;;  %p570_p11 = scmp.lt.u32.totalorder %s566_s20, %s876_s3 }
  0x39   :  { %p572_p12 = pnand %p570_p11, %p567_p10 }
  0x3b   :  { %575 = shalt.err (!%p572_p12)
}
  0x3c   :  { %s576_s1 = scalar_lea.vmem %s754_s30, 768  ;;  %p581_p0 = scmp.lt.s32.totalorder %s754_s30, %s754_s30 }
  0x3d   :  { %p577_p13 = scmp.ne.s32.totalorder %s754_s30, %s576_s1  ;;  %p582_p1 = scmp.lt.s32.totalorder %s576_s1, %s576_s1 }
  0x3f   :  { %p583_p2 = por %p582_p1, %p581_p0 }
  0x41   :  { %p584_p3 = pnand %p583_p2, %p577_p13 }
  0x43   :  { %587 = shalt.err (!%p584_p3)
}
  0x44   :  { %s670_s2 = smov 64   ;;  %s671_s13 = smov 4  }
  0x45   :  { %65 = dma.hbm_to_vmem [thread:$0]  %s876_s3, 768, %s754_s30, [#allocation12], %s670_s2, %s670_s2, %s671_s13  }
  0x46   :  { %654 = dma.done.wait [#allocation6], 256  }
  0x47   :  { %655 = vsyncadd [#allocation6], 4294967040 }
  0x48   :  { %656 = dma.done.wait [#allocation9], 512  }
  0x49   :  { %657 = vsyncadd [#allocation9], 4294966784 }
  0x4a   :  { %658 = dma.done.wait [#allocation12], 768  }
  0x4b   :  { %659 = vsyncadd [#allocation12], 4294966528  ;;  %vm85_vm0 = vcmask 523264   ;;  %v672_v0 = vmov 0.0   ;;  %vm673_vm1 = vmmov 0   ;;  %v494_v1 = vld [vmem:[#allocation11] sm:$0xff]  }
  0x4c   :  { %457 = vmatprep.subr.bf16.mxu0 %v672_v0  ;;  %465 = vmatprep.subr.bf16.mxu1 %v672_v0  ;;  %86 = vst.msk [vmem:[#allocation2] sm:$0xff] %vm85_vm0, %v672_v0  ;;  %87 = vst.msk [vmem:[#allocation2 + $0x8] sm:$0xff] %vm85_vm0, %v672_v0  ;;  %v495_v2 = vld [vmem:[#allocation11 + $0x8] sm:$0xff]   ;;  %v496_v3 = vld [vmem:[#allocation11 + $0x10] sm:$0xff]   ;;  %vm119_vm2 = vcmask 261120   ;;  %vm325_vm3 = vcmask 519168  }
  0x4d   :  { %88 = vst.msk [vmem:[#allocation3] sm:$0xff] %vm85_vm0, %v672_v0  ;;  %89 = vst.msk [vmem:[#allocation3 + $0x8] sm:$0xff] %vm85_vm0, %v672_v0  ;;  %461 = vmatprep.mubr.msk.bf16.mxu0 %vm673_vm1, %v672_v0  ;;  %469 = vmatprep.mubr.msk.bf16.mxu1 %vm673_vm1, %v672_v0  ;;  %v92_v4 = vld [vmem:[#allocation5] sm:$0xff]  ;;  %v93_v5 = vld [vmem:[#allocation5 + $0x8] sm:$0xff]  ;;  %s674_s30 = smov [#allocation13]   ;;  %s675_s9 = smov [#allocation14]  }
  0x4e   :  { %90 = vst.msk [vmem:[#allocation4] sm:$0xff] %vm85_vm0, %v672_v0  ;;  %91 = vst.msk [vmem:[#allocation4 + $0x8] sm:$0xff] %vm85_vm0, %v672_v0  ;;  %458 = vmatpush3.bf16.msra.mxu0 %v494_v1  ;;  %466 = vmatpush3.bf16.msra.mxu1 %v496_v3  ;;  %v497_v6 = vld [vmem:[#allocation11 + $0x20] sm:$0xff]   ;;  %v94_v7 = vpack.c.bf16 %v93_v5, %v92_v4  ;;  %v498_v8 = vld [vmem:[#allocation11 + $0x18] sm:$0xff]   ;;  %s377_s8 = sshll.u32 %s674_s30, 4  ;;  %s389_s10 = sshll.u32 %s675_s9, 4  ;;  %s378_s8 = int_to_ptr.vmem [resolvable:$true] %s377_s8  ;;  %s817_s10 = int_to_ptr.vmem [resolvable:$true] %s389_s10 }
  0x4f   :  { %459 = vmatprep.subr.bf16.mxu0 %v672_v0  ;;  %467 = vmatprep.subr.bf16.mxu1 %v672_v0  ;;  %v95_v9 = vld [vmem:[#allocation8] sm:$0xff]  ;;  %v96_v10 = vld [vmem:[#allocation8 + $0x8] sm:$0xff]  ;;  %v98_v13 = vld [vmem:[#allocation10] sm:$0xff]  ;;  %s588_s15 = scalar_lea.vmem %s378_s8, 128  ;;  %p593_p5 = scmp.lt.s32.totalorder %s378_s8, %s378_s8 }
  0x50   :  { %v97_v11 = vpack.c.bf16 %v96_v10, %v95_v9  ;;  %v499_v12 = vld [vmem:[#allocation11 + $0x28] sm:$0xff]   ;;  %v99_v14 = vld [vmem:[#allocation10 + $0x8] sm:$0xff]  ;;  %v431_v35 = vld [vmem:[%s877_s4] ss:$0 sm:$0xff]  ;;  %p589_p4 = scmp.ne.s32.totalorder %s378_s8, %s588_s15  ;;  %p594_p6 = scmp.lt.s32.totalorder %s588_s15, %s588_s15 }
  0x51   :  { %v100_v15 = vpack.c.bf16 %v99_v14, %v98_v13  ;;  %v435_v39 = vld [vmem:[%s877_s4 + $0x1] ss:$0 sm:$0xff]  ;;  %v439_v53 = vld [vmem:[%s877_s4 + $0x2] ss:$0 sm:$0xff] }
  0x52   :  { %460 = vmatpush3.bf16.msra.mxu0 %v495_v2  ;;  %468 = vmatpush3.bf16.msra.mxu1 %v498_v8  ;;  %p595_p7 = por %p594_p6, %p593_p5 }
  0x53   :  { %473 = vmatprep.subr.bf16.mxu0 %v672_v0  ;;  %v101_v16 = vld [vmem:[#allocation2] sm:$0xff]  ;;  %v102_v18 = vld [vmem:[#allocation2 + $0x8] sm:$0xff] }
  0x54   :  { %v169_v19 = vld [vmem:[#allocation3] sm:$0xff]  ;;  %v170_v24 = vld [vmem:[#allocation3 + $0x8] sm:$0xff]  ;;  %p596_p8 = pnand %p595_p7, %p589_p4 }
  0x55   :  { %462 = vmatmul.mubr.msk.bf16.vlgmr.msra.gmra.mrb[0].mxu0 %vm119_vm2, %v94_v7  ;;  %470 = vmatmul.mubr.msk.bf16.vlgmr.msra.gmra.mrb[0].mxu1 %vm119_vm2, %v97_v11  ;;  %v236_v32 = vld [vmem:[#allocation4] sm:$0xff]  ;;  %v237_v34 = vld [vmem:[#allocation4 + $0x8] sm:$0xff] }
  0x56   :  { %474 = vmatpush3.bf16.msra.mxu0 %v497_v6  ;;  %477 = vmatprep.mubr.msk.bf16.mxu0 %vm673_vm1, %v672_v0 }
  0x57   :  { %475 = vmatprep.subr.bf16.mxu0 %v672_v0 }
  0x5a   :  { %476 = vmatpush3.bf16.msra.mxu0 %v499_v12 }
  0x5d   :  { %478 = vmatmul.mubr.msk.bf16.vlgmr.msra.gmra.mrb[4].mxu0 %vm119_vm2, %v100_v15 }
 0x128   :  { %v157_v17 = vpop.f32.mrb[0].mxu0  ;;  %v225_v23 = vpop.f32.mrb[0].mxu1 }
 0x129   :  { %v164_v20 = vadd.f32 %v157_v17, %v101_v16  ;;  %v463_v21 = vpop.f32.mrb[1].mxu0  ;;  %v232_v27 = vadd.f32 %v225_v23, %v169_v19  ;;  %v471_v28 = vpop.f32.mrb[1].mxu1 }
 0x12a   :  { %v160_v22 = vpop.f32.mrb[2].mxu0  ;;  %v228_v29 = vpop.f32.mrb[2].mxu1 }
 0x12b   :  { %167 = vst.msk [vmem:[#allocation2] sm:$0xff] %vm85_vm0, %v164_v20  ;;  %v165_v25 = vadd.f32 %v160_v22, %v102_v18  ;;  %v464_v26 = vpop.f32.mrb[3].mxu0  ;;  %234 = vst.msk [vmem:[#allocation3] sm:$0xff] %vm85_vm0, %v232_v27  ;;  %v233_v30 = vadd.f32 %v228_v29, %v170_v24  ;;  %v472_v31 = vpop.f32.mrb[3].mxu1 }
 0x12d   :  { %168 = vst.msk [vmem:[#allocation2 + $0x8] sm:$0xff] %vm85_vm0, %v165_v25  ;;  %235 = vst.msk [vmem:[#allocation3 + $0x8] sm:$0xff] %vm85_vm0, %v233_v30 }
 0x130   :  { %v292_v33 = vpop.f32.mrb[4].mxu0 }
 0x131   :  { %v299_v36 = vadd.f32 %v292_v33, %v236_v32  ;;  %v479_v37 = vpop.f32.mrb[5].mxu0 }
 0x132   :  { %v295_v38 = vpop.f32.mrb[6].mxu0  ;;  %v306_v40 = vld [vmem:[#allocation2] sm:$0xff]  ;;  %v328_v44 = vld [vmem:[#allocation3] sm:$0xff] }
 0x133   :  { %301 = vst.msk [vmem:[#allocation4] sm:$0xff] %vm85_vm0, %v299_v36  ;;  %v300_v41 = vadd.f32 %v295_v38, %v237_v34  ;;  %v480_v42 = vpop.f32.mrb[7].mxu0  ;;  %v315_v43 = vadd.f32 %v431_v35, %v306_v40  ;;  %v338_v46 = vadd.f32 %v435_v39, %v328_v44 }
 0x134   :  { %v307_v45 = vld [vmem:[#allocation2 + $0x8] sm:$0xff]  ;;  %v329_v49 = vld [vmem:[#allocation3 + $0x8] sm:$0xff] }
 0x135   :  { %302 = vst.msk [vmem:[#allocation4 + $0x8] sm:$0xff] %vm85_vm0, %v300_v41  ;;  %v316_v47 = vadd.f32 %v431_v35, %v307_v45  ;;  %v442_v48 = vpack.c.bf16 %v315_v43, %v315_v43  ;;  %v339_v50 = vadd.f32 %v435_v39, %v329_v49  ;;  %v444_v51 = vpack.c.bf16 %v338_v46, %v338_v46 }
 0x137   :  { %v443_v52 = vpack.c.bf16 %v316_v47, %v316_v47  ;;  %326 = vst.msk [vmem:[#allocation13] sm:$0xf] %vm325_vm3, %v442_v48  ;;  %v445_v54 = vpack.c.bf16 %v339_v50, %v339_v50  ;;  %348 = vst.msk [vmem:[#allocation14] sm:$0xf] %vm325_vm3, %v444_v51 }
 0x139   :  { %327 = vst.msk [vmem:[#allocation13 + $0x4] sm:$0xf] %vm325_vm3, %v443_v52 }
 0x13a   :  { %599 = shalt.err (!%p596_p8)
}
 0x13b   :  { %s600_s27 = scalar_lea.hbm %s878_s5, 128 }
 0x13c   :  { %p601_p9 = scmp.ne.s32.totalorder %s878_s5, %s600_s27  ;;  %p604_p10 = scmp.lt.u32.totalorder %s600_s27, %s878_s5 }
 0x13e   :  { %p606_p11 = pnand %p604_p10, %p601_p9 }
 0x140   :  { %609 = shalt.err (!%p606_p11)
}
 0x141   :  { %383 = dma.vmem_to_hbm [thread:$0]  %s378_s8, 128, %s878_s5, [#allocation7], %s670_s2, %s670_s2, %s671_s13   ;;  %v350_v55 = vld [vmem:[#allocation4] sm:$0xff]  ;;  %349 = vst.msk [vmem:[#allocation14 + $0x4] sm:$0xf] %vm325_vm3, %v445_v54 }
 0x142   :  { %v360_v56 = vadd.f32 %v439_v53, %v350_v55  ;;  %s676_s22 = smov [#allocation16]   ;;  %s610_s24 = scalar_lea.vmem %s817_s10, 128 }
 0x143   :  { %s401_s23 = sshll.u32 %s676_s22, 4  ;;  %p611_p12 = scmp.ne.s32.totalorder %s817_s10, %s610_s24  ;;  %s402_s23 = int_to_ptr.vmem [resolvable:$true] %s401_s23 }
 0x144   :  { %p615_p13 = scmp.lt.s32.totalorder %s817_s10, %s817_s10  ;;  %p616_p0 = scmp.lt.s32.totalorder %s610_s24, %s610_s24 }
 0x146   :  { %p617_p1 = por %p616_p0, %p615_p13 }
 0x148   :  { %p618_p2 = pnand %p617_p1, %p611_p12 }
 0x14a   :  { %621 = shalt.err (!%p618_p2)
}
 0x14b   :  { %s622_s25 = scalar_lea.hbm %s879_s6, 128 }
 0x14c   :  { %p623_p3 = scmp.ne.s32.totalorder %s879_s6, %s622_s25  ;;  %p626_p4 = scmp.lt.u32.totalorder %s622_s25, %s879_s6 }
 0x14e   :  { %p628_p5 = pnand %p626_p4, %p623_p3 }
 0x150   :  { %631 = shalt.err (!%p628_p5)
}
 0x151   :  { %395 = dma.vmem_to_hbm [thread:$0]  %s817_s10, 128, %s879_s6, [#allocation15], %s670_s2, %s670_s2, %s671_s13   ;;  %v351_v57 = vld [vmem:[#allocation4 + $0x8] sm:$0xff]  ;;  %v446_v59 = vpack.c.bf16 %v360_v56, %v360_v56 }
 0x152   :  { %v361_v58 = vadd.f32 %v439_v53, %v351_v57  ;;  %s632_s8 = scalar_lea.vmem %s402_s23, 128  ;;  %p637_p7 = scmp.lt.s32.totalorder %s402_s23, %s402_s23 }
 0x153   :  { %370 = vst.msk [vmem:[#allocation16] sm:$0xf] %vm325_vm3, %v446_v59  ;;  %p633_p6 = scmp.ne.s32.totalorder %s402_s23, %s632_s8  ;;  %p638_p8 = scmp.lt.s32.totalorder %s632_s8, %s632_s8 }
 0x154   :  { %v447_v60 = vpack.c.bf16 %v361_v58, %v361_v58 }
 0x155   :  { %p639_p9 = por %p638_p8, %p637_p7 }
 0x156   :  { %371 = vst.msk [vmem:[#allocation16 + $0x4] sm:$0xf] %vm325_vm3, %v447_v60 }
 0x157   :  { %p640_p10 = pnand %p639_p9, %p633_p6 }
 0x159   :  { %643 = shalt.err (!%p640_p10)
}
 0x15a   :  { %s644_s6 = scalar_lea.hbm %s880_s7, 128 }
 0x15b   :  { %p645_p11 = scmp.ne.s32.totalorder %s880_s7, %s644_s6  ;;  %p648_p12 = scmp.lt.u32.totalorder %s644_s6, %s880_s7 }
 0x15d   :  { %p650_p13 = pnand %p648_p12, %p645_p11 }
 0x15f   :  { %653 = shalt.err (!%p650_p13)
}
 0x160   :  { %407 = dma.vmem_to_hbm [thread:$0]  %s402_s23, 128, %s880_s7, [#allocation15], %s670_s2, %s670_s2, %s671_s13  }
 0x161   :  { %660 = dma.done.wait [#allocation7], 128  }
 0x162   :  { %661 = vsyncadd [#allocation7], 4294967168 }
 0x163   :  { %662 = dma.done.wait [#allocation15], 256  }
 0x164   :  { %663 = vsyncadd [#allocation15], 4294967040 }
 0x165   :  { %417 = vsyncpa [#allocation6], 1 }
 0x166   :  { %418 = vsyncpa [#allocation9], 1 }
 0x167   :  { %419 = vsyncpa [#allocation12], 1 }
 0x168   :  { %420 = vsyncpa [#allocation7], 1 }
 0x169   :  { %421 = vsyncpa [#allocation15], 1 }

</bundles_post_ra>
